<compile_context>
chip_gen: v7x
topology: tpu7x:2x2x1
jax: 0.10.0
libtpu: 0.0.40
codegen_flags: <defaults>
</compile_context>

<pallas_src>
import functools
import math

import jax
import jax.numpy as jnp
from jax.experimental import pallas as pl
from jax.experimental.pallas import tpu as pltpu

_HW_TILE_CAP = 2048  # lanes per grid step for the spatial axis


# ---------------------------------------------------------------------------
# Pass 1: global average pool (tiled over HW) + squeeze-excite -> gate y[C,1]
# ---------------------------------------------------------------------------
def _pool_se_kernel(x_ref, w1_ref, w2_ref, o_ref, acc_ref, *, inv_hw):
    t = pl.program_id(1)

    @pl.when(t == 0)
    def _():
        acc_ref[...] = jnp.zeros_like(acc_ref)

    # Partial channel sums for this HW tile (lane-axis reduce), f32 accumulate.
    x = x_ref[0].astype(jnp.float32)                           # [C, tile]
    acc_ref[...] += jnp.sum(x, axis=-1, keepdims=True)         # [C, 1]

    @pl.when(t == pl.num_programs(1) - 1)
    def _():
        y = acc_ref[...] * inv_hw                              # mean_HW(x): [C, 1]
        y = jnp.maximum(
            jnp.dot(w1_ref[...], y, preferred_element_type=jnp.float32), 0.0)  # [Cr,1]
        y = jax.nn.sigmoid(
            jnp.dot(w2_ref[...], y, preferred_element_type=jnp.float32))       # [C, 1]
        o_ref[0] = y


# ---------------------------------------------------------------------------
# Pass 2: channel gating fused with the 1x1 fusion conv:  out = Wf @ (x * y)
# ---------------------------------------------------------------------------
def _gate_fuse_kernel(x_ref, y_ref, wf_ref, o_ref):
    x = x_ref[0]                                               # [C, tile] bf16
    y = y_ref[0]                                               # [C, 1]    f32
    # Gate in f32 (v5e-safe), cast only the MXU operand back to bf16.
    xg = (x.astype(jnp.float32) * y).astype(jnp.bfloat16)      # [C, tile]
    o_ref[0] = jnp.dot(
        wf_ref[...], xg, preferred_element_type=jnp.float32).astype(o_ref.dtype)


# ---------------------------------------------------------------------------
# Helpers
# ---------------------------------------------------------------------------
def _ceil_to(x, m):
    return -(-x // m) * m


def _pick_hw_tile(hw, cap=_HW_TILE_CAP):
    """Largest multiple-of-128 divisor of hw that is <= cap (whole image if small)."""
    if hw <= cap:
        return hw
    best = None
    t = 128
    while t <= cap:
        if hw % t == 0:
            best = t
        t += 128
    return best if best is not None else hw


def _block_bytes(shape, dtype):
    """Padded VMEM bytes of one block ((sublane, lane) tiling aware)."""
    itemsize = jnp.dtype(dtype).itemsize
    sublane = {4: 8, 2: 16, 1: 32}.get(itemsize, 8)
    dims = list(shape)
    if len(dims) >= 1:
        dims[-1] = _ceil_to(dims[-1], 128)
    if len(dims) >= 2:
        dims[-2] = _ceil_to(dims[-2], sublane)
    n = 1
    for d in dims:
        n *= int(d)
    return n * itemsize


def _vmem_limit(block_bytes_total):
    # double-buffered blocks + slack, clamped to sane bounds (v7x phys = 64 MiB)
    return int(min(56 << 20, max(8 << 20, 2 * block_bytes_total + (2 << 20))))


# ---------------------------------------------------------------------------
# Forward
# ---------------------------------------------------------------------------
def cal_forward(params, x_nchw, *, tile_cap=_HW_TILE_CAP, out_dtype=jnp.bfloat16):
    """CAL forward. x_nchw: [B, C, H, W] -> [B, Cout, H, W] (out_dtype)."""
    w1, w2, wf = params["w1"], params["w2"], params["wf"]      # [Cr,C], [C,Cr], [Cout,C]
    B, C, H, W = x_nchw.shape
    HW = H * W
    Cr = w1.shape[0]
    Cout = wf.shape[0]

    # Native NCHW slab: pure reshape, no transpose.  bf16 activations; in a
    # full network the producer would already emit bf16 and this cast is free.
    x = x_nchw.reshape(B, C, HW)
    if x.dtype != jnp.bfloat16:
        x = x.astype(jnp.bfloat16)
    wf_bf = wf.astype(jnp.bfloat16)

    tile = _pick_hw_tile(HW, tile_cap)
    assert HW % tile == 0, (HW, tile)
    T = HW // tile

    # ---- pass 1: per-image channel gate y ---------------------------------
    p1_bytes = (_block_bytes((1, C, tile), jnp.bfloat16)
                + _block_bytes((Cr, C), jnp.float32)
                + _block_bytes((C, Cr), jnp.float32)
                + _block_bytes((1, C, 1), jnp.float32)
                + _block_bytes((C, 1), jnp.float32))
    y = pl.pallas_call(
        functools.partial(_pool_se_kernel, inv_hw=1.0 / HW),
        out_shape=jax.ShapeDtypeStruct((B, C, 1), jnp.float32),
        grid_spec=pltpu.PrefetchScalarGridSpec(
            num_scalar_prefetch=0,
            grid=(B, T),
            in_specs=[
                pl.BlockSpec((1, C, tile), lambda b, t: (b, 0, t)),
                pl.BlockSpec((Cr, C), lambda b, t: (0, 0)),
                pl.BlockSpec((C, Cr), lambda b, t: (0, 0)),
            ],
            out_specs=pl.BlockSpec((1, C, 1), lambda b, t: (b, 0, 0)),
            scratch_shapes=[pltpu.VMEM((C, 1), jnp.float32)],
        ),
        compiler_params=pltpu.CompilerParams(
            dimension_semantics=("parallel", "arbitrary"),
            vmem_limit_bytes=_vmem_limit(p1_bytes)),
    )(x, w1, w2)

    # ---- pass 2: out = Wf @ (x * y)  (NCHW result, lane-dense stores) ------
    p2_bytes = (_block_bytes((1, C, tile), jnp.bfloat16)
                + _block_bytes((1, C, 1), jnp.float32)
                + _block_bytes((Cout, C), jnp.bfloat16)
                + _block_bytes((1, Cout, tile), out_dtype))
    out = pl.pallas_call(
        _gate_fuse_kernel,
        out_shape=jax.ShapeDtypeStruct((B, Cout, HW), out_dtype),
        grid_spec=pltpu.PrefetchScalarGridSpec(
            num_scalar_prefetch=0,
            grid=(B, T),
            in_specs=[
                pl.BlockSpec((1, C, tile), lambda b, t: (b, 0, t)),
                pl.BlockSpec((1, C, 1), lambda b, t: (b, 0, 0)),
                pl.BlockSpec((Cout, C), lambda b, t: (0, 0)),
            ],
            out_specs=pl.BlockSpec((1, Cout, tile), lambda b, t: (b, 0, t)),
        ),
        compiler_params=pltpu.CompilerParams(
            dimension_semantics=("parallel", "parallel"),
            vmem_limit_bytes=_vmem_limit(p2_bytes)),
    )(x, y, wf_bf)

    return out.reshape(B, Cout, H, W)


cal_forward_jit = jax.jit(cal_forward, static_argnames=("tile_cap", "out_dtype"))


# ---------------------------------------------------------------------------
# Parameter init (mirrors nn.Conv2d kaiming-uniform default, bias=False),
# stored in [Cout, Cin] layout (torch conv weight [Cout, Cin, 1, 1] squeezed),
# which is directly the NCHW matmul layout  y_out = W @ y_in.
# ---------------------------------------------------------------------------
def init_cal(key, cin, cout, reduction=16):
    cr = cin // reduction
    k1, k2, k3 = jax.random.split(key, 3)

    def conv1x1(k, ci, co):
        bound = 1.0 / math.sqrt(ci)                    # fan_in = ci * 1 * 1
        return jax.random.uniform(k, (co, ci), jnp.float32, -bound, bound)

    return {
        "w1": conv1x1(k1, cin, cr),    # conv_du[0]
        "w2": conv1x1(k2, cr, cin),    # conv_du[2]
        "wf": conv1x1(k3, cin, cout),  # fusion_layer
    }


# ---------------------------------------------------------------------------
# Pure-JAX f32 reference (matches PyTorch CAL.forward semantics, bias=False).
# ---------------------------------------------------------------------------
def cal_reference(params, x_nchw):
    x = x_nchw.astype(jnp.float32)                               # [B,C,H,W]
    y = jnp.mean(x, axis=(2, 3))                                 # AdaptiveAvgPool2d(1)
    y = jnp.maximum(jnp.einsum("oc,bc->bo", params["w1"], y), 0.0)
    y = jax.nn.sigmoid(jnp.einsum("oc,bc->bo", params["w2"], y))
    xg = x * y[:, :, None, None]                                 # x * y
    return jnp.einsum("oc,bchw->bohw", params["wf"], xg)         # fusion 1x1 conv


if __name__ == "__main__":
    key = jax.random.PRNGKey(0)
    pk, xk = jax.random.split(key)

    # Shapes matching CAL's use inside SASFNet (cal33: CAL(131, 128)), small spatial.
    B, CIN, COUT, R = 2, 131, 128, 16
    H = W = 16

    params = init_cal(pk, CIN, COUT, R)
    x = jax.random.normal(xk, (B, CIN, H, W), jnp.float32)       # NCHW

    out = jax.block_until_ready(cal_forward_jit(params, x))
    assert out.shape == (B, COUT, H, W), out.shape
    out_f32 = out.astype(jnp.float32)
    assert bool(jnp.all(jnp.isfinite(out_f32)))

    ref = jax.block_until_ready(jax.jit(cal_reference)(params, x))
    max_err = float(jnp.max(jnp.abs(out_f32 - ref)))
    # bf16 activations/weights/output with f32 accumulation: abs error O(1e-2)
    # against the pure-f32 reference at these magnitudes.
    assert max_err < 1e-1, f"mismatch vs reference: {max_err}"

    print("KERNEL_OK")
</pallas_src>

<mosaic_0001>
module attributes {stable_mosaic.version = 11 : i64} {
  func.func @_pool_se_kernel(%arg0: i32, %arg1: i32, %arg2: memref<1x131x256xbf16, #tpu.memory_space<vmem>>, %arg3: memref<8x131xf32, #tpu.memory_space<vmem>>, %arg4: memref<131x8xf32, #tpu.memory_space<vmem>>, %arg5: memref<1x131x1xf32, #tpu.memory_space<vmem>>, %arg6: memref<131x1xf32, #tpu.memory_space<vmem>>) attributes {dimension_semantics = [#tpu.dimension_semantics<parallel>, #tpu.dimension_semantics<arbitrary>], iteration_bounds = array<i64: 2, 1>, scalar_prefetch = 0 : i64, scratch_operands = 1 : i64, tpu.core_type = #tpu.core_type<tc>, window_params = [{transform_indices = @transform_0, window_bounds = array<i64: 1, 131, 256>}, {pipeline_mode = #tpu.pipeline_mode<synchronous>, transform_indices = @transform_1, window_bounds = array<i64: 8, 131>}, {pipeline_mode = #tpu.pipeline_mode<synchronous>, transform_indices = @transform_2, window_bounds = array<i64: 131, 8>}, {transform_indices = @transform_3, window_bounds = array<i64: 1, 131, 1>}]} {
    %c0_i32 = arith.constant 0 : i32
    %0 = arith.cmpi eq, %arg1, %c0_i32 : i32
    %1 = arith.extui %0 : i1 to i32
    %c0_i32_0 = arith.constant 0 : i32
    %2 = arith.cmpi ne, %1, %c0_i32_0 : i32
    scf.if %2 {
      %cst_9 = arith.constant 0.000000e+00 : f32
      %14 = vector.broadcast %cst_9 : f32 to vector<131x1xf32>
      %c0_10 = arith.constant 0 : index
      %c0_11 = arith.constant 0 : index
      %15 = vector.load %arg6[%c0_10, %c0_11] : memref<131x1xf32, #tpu.memory_space<vmem>>, vector<131x1xf32>
      tpu.vector_store %arg6[%c0_10, %c0_11], %14 {strides = array<i32>} : memref<131x1xf32, #tpu.memory_space<vmem>>, vector<131x1xf32>,
    } else {
    }
    %c0 = arith.constant 0 : index
    %c0_1 = arith.constant 0 : index
    %c0_2 = arith.constant 0 : index
    %3 = vector.load %arg2[%c0, %c0_1, %c0_2] : memref<1x131x256xbf16, #tpu.memory_space<vmem>>, vector<1x131x256xbf16>
    %4 = vector.shape_cast %3 : vector<1x131x256xbf16> to vector<131x256xbf16>
    %5 = arith.extf %4 : vector<131x256xbf16> to vector<131x256xf32>
    %c0_3 = arith.constant 0 : index
    %c0_4 = arith.constant 0 : index
    %6 = vector.load %arg6[%c0_3, %c0_4] : memref<131x1xf32, #tpu.memory_space<vmem>>, vector<131x1xf32>
    %cst = arith.constant dense<0.000000e+00> : vector<131xf32>
    %7 = vector.multi_reduction <add>, %5, %cst [1] : vector<131x256xf32> to vector<131xf32>
    %8 = vector.shape_cast %7 : vector<131xf32> to vector<131x1xf32>
    %9 = arith.addf %6, %8 : vector<131x1xf32>
    %c0_5 = arith.constant 0 : index
    %c0_6 = arith.constant 0 : index
    %10 = vector.load %arg6[%c0_5, %c0_6] : memref<131x1xf32, #tpu.memory_space<vmem>>, vector<131x1xf32>
    tpu.vector_store %arg6[%c0_5, %c0_6], %9 {strides = array<i32>} : memref<131x1xf32, #tpu.memory_space<vmem>>, vector<131x1xf32>,
    %c0_i32_7 = arith.constant 0 : i32
    %11 = arith.cmpi eq, %arg1, %c0_i32_7 : i32
    %12 = arith.extui %11 : i1 to i32
    %c0_i32_8 = arith.constant 0 : i32
    %13 = arith.cmpi ne, %12, %c0_i32_8 : i32
    scf.if %13 {
      %c0_9 = arith.constant 0 : index
      %c0_10 = arith.constant 0 : index
      %14 = vector.load %arg6[%c0_9, %c0_10] : memref<131x1xf32, #tpu.memory_space<vmem>>, vector<131x1xf32>
      %cst_11 = arith.constant 3.906250e-03 : f32
      %15 = vector.broadcast %cst_11 : f32 to vector<131x1xf32>
      %16 = arith.mulf %14, %15 : vector<131x1xf32>
      %c0_12 = arith.constant 0 : index
      %c0_13 = arith.constant 0 : index
      %17 = vector.load %arg3[%c0_12, %c0_13] : memref<8x131xf32, #tpu.memory_space<vmem>>, vector<8x131xf32>
      %cst_14 = arith.constant dense<0.000000e+00> : vector<8x1xf32>
      %18 = tpu.matmul %17, %16, %cst_14 {dimension_numbers = #tpu.dot_dimension_numbers<[1], [0], [0], [1], [0, 0, 1, 1], [], []>} : vector<8x131xf32>, vector<131x1xf32>, vector<8x1xf32> -> vector<8x1xf32>
      %cst_15 = arith.constant 0.000000e+00 : f32
      %19 = vector.broadcast %cst_15 : f32 to vector<8x1xf32>
      %20 = arith.maximumf %18, %19 : vector<8x1xf32>
      %c0_16 = arith.constant 0 : index
      %c0_17 = arith.constant 0 : index
      %21 = vector.load %arg4[%c0_16, %c0_17] : memref<131x8xf32, #tpu.memory_space<vmem>>, vector<131x8xf32>
      %cst_18 = arith.constant dense<0.000000e+00> : vector<131x1xf32>
      %22 = tpu.matmul %21, %20, %cst_18 {dimension_numbers = #tpu.dot_dimension_numbers<[1], [0], [0], [1], [0, 0, 1, 1], [], []>} : vector<131x8xf32>, vector<8x1xf32>, vector<131x1xf32> -> vector<131x1xf32>
      %23 = arith.negf %22 : vector<131x1xf32>
      %24 = math.exp %23 : vector<131x1xf32>
      %cst_19 = arith.constant 1.000000e+00 : f32
      %25 = vector.broadcast %cst_19 : f32 to vector<131x1xf32>
      %26 = arith.addf %25, %24 : vector<131x1xf32>
      %27 = arith.divf %25, %26 : vector<131x1xf32>
      %c0_20 = arith.constant 0 : index
      %c0_21 = arith.constant 0 : index
      %c0_22 = arith.constant 0 : index
      %28 = vector.load %arg5[%c0_20, %c0_21, %c0_22] : memref<1x131x1xf32, #tpu.memory_space<vmem>>, vector<1x131x1xf32>
      %29 = vector.shape_cast %28 : vector<1x131x1xf32> to vector<131x1xf32>
      %30 = vector.shape_cast %27 : vector<131x1xf32> to vector<1x131x1xf32>
      tpu.vector_store %arg5[%c0_20, %c0_21, %c0_22], %30 {strides = array<i32>} : memref<1x131x1xf32, #tpu.memory_space<vmem>>, vector<1x131x1xf32>,
    } else {
    }
    return
  }
  func.func @transform_0(%arg0: i32, %arg1: i32) -> (i32, i32, i32) {
    %c0_i32 = arith.constant 0 : i32
    %c0_i32_0 = arith.constant 0 : i32
    return %arg0, %c0_i32, %arg1 : i32, i32, i32
  }
  func.func @transform_1(%arg0: i32, %arg1: i32) -> (i32, i32) {
    %c0_i32 = arith.constant 0 : i32
    %c0_i32_0 = arith.constant 0 : i32
    %c0_i32_1 = arith.constant 0 : i32
    return %c0_i32, %c0_i32_0 : i32, i32
  }
  func.func @transform_2(%arg0: i32, %arg1: i32) -> (i32, i32) {
    %c0_i32 = arith.constant 0 : i32
    %c0_i32_0 = arith.constant 0 : i32
    %c0_i32_1 = arith.constant 0 : i32
    return %c0_i32, %c0_i32_0 : i32, i32
  }
  func.func @transform_3(%arg0: i32, %arg1: i32) -> (i32, i32, i32) {
    %c0_i32 = arith.constant 0 : i32
    %c0_i32_0 = arith.constant 0 : i32
    %c0_i32_1 = arith.constant 0 : i32
    return %arg0, %c0_i32, %c0_i32_0 : i32, i32, i32
  }
}

module attributes {stable_mosaic.version = 11 : i64} {
  func.func @_gate_fuse_kernel(%arg0: i32, %arg1: i32, %arg2: memref<1x131x256xbf16, #tpu.memory_space<vmem>>, %arg3: memref<1x131x1xf32, #tpu.memory_space<vmem>>, %arg4: memref<128x131xbf16, #tpu.memory_space<vmem>>, %arg5: memref<1x128x256xbf16, #tpu.memory_space<vmem>>) attributes {dimension_semantics = [#tpu.dimension_semantics<parallel>, #tpu.dimension_semantics<parallel>], iteration_bounds = array<i64: 2, 1>, scalar_prefetch = 0 : i64, scratch_operands = 0 : i64, tpu.core_type = #tpu.core_type<tc>, window_params = [{transform_indices = @transform_0, window_bounds = array<i64: 1, 131, 256>}, {transform_indices = @transform_1, window_bounds = array<i64: 1, 131, 1>}, {pipeline_mode = #tpu.pipeline_mode<synchronous>, transform_indices = @transform_2, window_bounds = array<i64: 128, 131>}, {transform_indices = @transform_3, window_bounds = array<i64: 1, 128, 256>}]} {
    %c0 = arith.constant 0 : index
    %c0_0 = arith.constant 0 : index
    %c0_1 = arith.constant 0 : index
    %0 = vector.load %arg2[%c0, %c0_0, %c0_1] : memref<1x131x256xbf16, #tpu.memory_space<vmem>>, vector<1x131x256xbf16>
    %1 = vector.shape_cast %0 : vector<1x131x256xbf16> to vector<131x256xbf16>
    %c0_2 = arith.constant 0 : index
    %c0_3 = arith.constant 0 : index
    %c0_4 = arith.constant 0 : index
    %2 = vector.load %arg3[%c0_2, %c0_3, %c0_4] : memref<1x131x1xf32, #tpu.memory_space<vmem>>, vector<1x131x1xf32>
    %3 = vector.shape_cast %2 : vector<1x131x1xf32> to vector<131x1xf32>
    %4 = arith.extf %1 : vector<131x256xbf16> to vector<131x256xf32>
    %5 = vector.broadcast %3 : vector<131x1xf32> to vector<131x256xf32>
    %6 = arith.mulf %4, %5 : vector<131x256xf32>
    %7 = arith.truncf %6 : vector<131x256xf32> to vector<131x256xbf16>
    %c0_5 = arith.constant 0 : index
    %c0_6 = arith.constant 0 : index
    %8 = vector.load %arg4[%c0_5, %c0_6] : memref<128x131xbf16, #tpu.memory_space<vmem>>, vector<128x131xbf16>
    %cst = arith.constant dense<0.000000e+00> : vector<128x256xf32>
    %9 = tpu.matmul %8, %7, %cst {dimension_numbers = #tpu.dot_dimension_numbers<[1], [0], [0], [1], [0, 0, 1, 1], [], []>} : vector<128x131xbf16>, vector<131x256xbf16>, vector<128x256xf32> -> vector<128x256xf32>
    %10 = arith.truncf %9 : vector<128x256xf32> to vector<128x256xbf16>
    %c0_7 = arith.constant 0 : index
    %c0_8 = arith.constant 0 : index
    %c0_9 = arith.constant 0 : index
    %11 = vector.load %arg5[%c0_7, %c0_8, %c0_9] : memref<1x128x256xbf16, #tpu.memory_space<vmem>>, vector<1x128x256xbf16>
    %12 = vector.shape_cast %11 : vector<1x128x256xbf16> to vector<128x256xbf16>
    %13 = vector.shape_cast %10 : vector<128x256xbf16> to vector<1x128x256xbf16>
    tpu.vector_store %arg5[%c0_7, %c0_8, %c0_9], %13 {strides = array<i32>} : memref<1x128x256xbf16, #tpu.memory_space<vmem>>, vector<1x128x256xbf16>,
    return
  }
  func.func @transform_0(%arg0: i32, %arg1: i32) -> (i32, i32, i32) {
    %c0_i32 = arith.constant 0 : i32
    %c0_i32_0 = arith.constant 0 : i32
    return %arg0, %c0_i32, %arg1 : i32, i32, i32
  }
  func.func @transform_1(%arg0: i32, %arg1: i32) -> (i32, i32, i32) {
    %c0_i32 = arith.constant 0 : i32
    %c0_i32_0 = arith.constant 0 : i32
    %c0_i32_1 = arith.constant 0 : i32
    return %arg0, %c0_i32, %c0_i32_0 : i32, i32, i32
  }
  func.func @transform_2(%arg0: i32, %arg1: i32) -> (i32, i32) {
    %c0_i32 = arith.constant 0 : i32
    %c0_i32_0 = arith.constant 0 : i32
    %c0_i32_1 = arith.constant 0 : i32
    return %c0_i32, %c0_i32_0 : i32, i32
  }
  func.func @transform_3(%arg0: i32, %arg1: i32) -> (i32, i32, i32) {
    %c0_i32 = arith.constant 0 : i32
    %c0_i32_0 = arith.constant 0 : i32
    return %arg0, %c0_i32, %arg1 : i32, i32, i32
  }
}

</mosaic_0001>

<bundles_post_ra>
// kernel: cal_forward.2
= control target key start
LH: loop header
LB: loop body
LE: loop exit
PB: predicated region body
PF: predicated region fallthrough
CT: control target
= control target key end

     0   :  { %s1189_s12 = smov 0   ;;  %s1191_s13 = smov 0   ;;  %s1463_s0 = inlined_call_operand.vmem [shape: bf16[2,131,256], index: 0, kind: input, shape index: {}]   ;;  %s1464_s1 = inlined_call_operand.vmem [shape: f32[8,131], index: 1, kind: input, shape index: {}]   ;;  %s1465_s2 = inlined_call_operand.vmem [shape: f32[131,8], index: 2, kind: input, shape index: {}]   ;;  %s1466_s3 = inlined_call_operand.vmem [shape: f32[2,131,1], index: 3, kind: output, shape index: {}]  }
   0x1   :  { %s1193_s14 = smov 0  }
   0x2 LB: > { %s25_s15 = sadd.s32 1, %s1160_s13  ;;  %p908_p0 = scmp.ge.s32.totalorder %s1164_s14, 1  ;;  %s1164_s14 = sphi %s1193_s14, %s13_s14   ;;  %s1160_s13 = sphi %s1191_s13, %s1468_s13   ;;  %s1156_s12 = sphi %s1189_s12, %s1467_s12  }
   0x3   : > { %p27_p1 = scmp.ge.s32.totalorder %s25_s15, 2  ;;  %p156_p2 = scmp.lt.s32.totalorder %s1164_s14, 3 }
   0x5   : > { %s1470_s15 = smov (%p27_p1, %s25_s15), 0  ;;  %p157_p3 = pnand %p908_p0, %p156_p2 }
   0x6   : > { %p185_p4 = scmp.lt.s32.totalorder (!%p157_p3), %s1156_s12, 1  ;;  %vm203_vm0 = vcmask (!%p157_p3), 7168   ;;  %v1166_v0 = vmov (!%p157_p3), 0.0   ;;  %vm338_vm1 = vcmask (!%p157_p3), 1042432   ;;  %vm220_vm2 = vcmask (!%p157_p3), 2048  }
   0x7   : > { %160 = sbr.rel (%p157_p3) target bundleno = 718 (0x2ce), region = 32  ;;  %206 = vst.msk [vmem:[#allocation2 + $0x10] sm:$0xff] (!%p157_p3), %vm203_vm0, %v1166_v0  ;;  %204 = vst.msk [vmem:[#allocation2] sm:$0xff] (!%p157_p3), %vm203_vm0, %v1166_v0  ;;  %1044 = vmatprep.subr.mxu1 (!%p157_p3), %v1166_v0  ;;  %vm419_vm3 = vcmask (!%p157_p3), 23552   ;;  %vm1168_vm4 = vmmov (!%p157_p3), 0   ;;  %vm514_vm5 = vcmask (!%p157_p3), 64512  }
   0x8   : > { %205 = vst.msk [vmem:[#allocation2 + $0x8] sm:$0xff] (!%p157_p3), %vm203_vm0, %v1166_v0  ;;  %207 = vst.msk [vmem:[#allocation2 + $0x18] sm:$0xff] (!%p157_p3), %vm203_vm0, %v1166_v0  ;;  %981 = vmatprep.mubr.msk.f32.mxu1 (!%p157_p3), %vm1168_vm4, %v1166_v0 }
   0x9   : > { %208 = vst.msk [vmem:[#allocation2 + $0x20] sm:$0xff] (!%p157_p3), %vm203_vm0, %v1166_v0  ;;  %209 = vst.msk [vmem:[#allocation2 + $0x28] sm:$0xff] (!%p157_p3), %vm203_vm0, %v1166_v0 }
   0xa   : > { %210 = vst.msk [vmem:[#allocation2 + $0x30] sm:$0xff] (!%p157_p3), %vm203_vm0, %v1166_v0  ;;  %211 = vst.msk [vmem:[#allocation2 + $0x38] sm:$0xff] (!%p157_p3), %vm203_vm0, %v1166_v0 }
   0xb   : > { %212 = vst.msk [vmem:[#allocation2 + $0x40] sm:$0xff] (!%p157_p3), %vm203_vm0, %v1166_v0  ;;  %213 = vst.msk [vmem:[#allocation2 + $0x48] sm:$0xff] (!%p157_p3), %vm203_vm0, %v1166_v0 }
   0xc   : > { %214 = vst.msk [vmem:[#allocation2 + $0x50] sm:$0xff] (!%p157_p3), %vm203_vm0, %v1166_v0  ;;  %215 = vst.msk [vmem:[#allocation2 + $0x58] sm:$0xff] (!%p157_p3), %vm203_vm0, %v1166_v0 }
   0xd   : > { %216 = vst.msk [vmem:[#allocation2 + $0x60] sm:$0xff] (!%p157_p3), %vm203_vm0, %v1166_v0  ;;  %217 = vst.msk [vmem:[#allocation2 + $0x68] sm:$0xff] (!%p157_p3), %vm203_vm0, %v1166_v0 }
   0xe   : > { %218 = vst.msk [vmem:[#allocation2 + $0x70] sm:$0xff] %vm203_vm0, %v1166_v0  ;;  %219 = vst.msk [vmem:[#allocation2 + $0x78] sm:$0xff] %vm203_vm0, %v1166_v0  ;;  %s1472_s12 = smov (!%p185_p4, %s1156_s12), 1 }
   0xf   : > { %s1046_s16 = smul.u32 136, %s1472_s12  ;;  %221 = vst.msk [vmem:[#allocation2 + $0x80] sm:$0x7] %vm220_vm2, %v1166_v0 }
  0x11   : > { %s1254_s19 = scalar_lea.vmem %s1463_s0, %s1046_s16  ;;  %s1418_s11 = scalar_lea.vmem %s1466_s3, %s1046_s16 }
  0x12   : > { %v224_v1 = vld [vmem:[%s1254_s19 + $0x10] sm:$0xff]  ;;  %v222_v2 = vld [vmem:[%s1254_s19] sm:$0xff]  ;;  %v225_v3 = vld [vmem:[%s1254_s19 + $0x18] sm:$0xff] }
  0x13   : > { %v243_v4 = vunpack.c.l.bf16 %v224_v1  ;;  %v244_v5 = vunpack.c.h.bf16 %v224_v1  ;;  %v239_v6 = vunpack.c.l.bf16 %v222_v2  ;;  %v240_v7 = vunpack.c.h.bf16 %v222_v2  ;;  %v223_v8 = vld [vmem:[%s1254_s19 + $0x8] sm:$0xff]  ;;  %v226_v14 = vld [vmem:[%s1254_s19 + $0x20] sm:$0xff]  ;;  %v229_v23 = vld [vmem:[%s1254_s19 + $0x38] sm:$0xff] }
  0x14   : > { %v227_v9 = vld [vmem:[%s1254_s19 + $0x28] sm:$0xff]  ;;  %v245_v10 = vunpack.c.l.bf16 %v225_v3  ;;  %v246_v11 = vunpack.c.h.bf16 %v225_v3  ;;  %v241_v12 = vunpack.c.l.bf16 %v223_v8  ;;  %v242_v13 = vunpack.c.h.bf16 %v223_v8  ;;  %v228_v24 = vld [vmem:[%s1254_s19 + $0x30] sm:$0xff]  ;;  %v230_v32 = vld [vmem:[%s1254_s19 + $0x40] sm:$0xff] }
  0x15   : > { %v296_v15 = vadd.f32 %v244_v5, %v243_v4  ;;  %v290_v16 = vadd.f32 %v240_v7, %v239_v6  ;;  %v249_v17 = vunpack.c.l.bf16 %v227_v9  ;;  %v250_v18 = vunpack.c.h.bf16 %v227_v9  ;;  %v231_v31 = vld [vmem:[%s1254_s19 + $0x48] sm:$0xff]  ;;  %v233_v39 = vld [vmem:[%s1254_s19 + $0x58] sm:$0xff]  ;;  %v232_v40 = vld [vmem:[%s1254_s19 + $0x50] sm:$0xff] }
  0x16   : > { %v299_v19 = vadd.f32 %v246_v11, %v245_v10  ;;  %v293_v20 = vadd.f32 %v242_v13, %v241_v12  ;;  %v247_v21 = vunpack.c.l.bf16 %v226_v14  ;;  %v248_v22 = vunpack.c.h.bf16 %v226_v14  ;;  %v235_v47 = vld [vmem:[%s1254_s19 + $0x68] sm:$0xff]  ;;  %v234_v48 = vld [vmem:[%s1254_s19 + $0x60] sm:$0xff]  ;;  %v237_v55 = vld [vmem:[%s1254_s19 + $0x78] sm:$0xff] }
  0x17   : > { %297 = vadd.xlane.f32.xlu1 %v296_v15  ;;  %291 = vadd.xlane.f32.xlu0 %v290_v16  ;;  %v305_v25 = vadd.f32 %v250_v18, %v249_v17  ;;  %v253_v26 = vunpack.c.l.bf16 %v229_v23  ;;  %v254_v28 = vunpack.c.h.bf16 %v229_v23  ;;  %v251_v29 = vunpack.c.l.bf16 %v228_v24  ;;  %v236_v56 = vld [vmem:[%s1254_s19 + $0x70] sm:$0xff]  ;;  %v238_v57 = vld [vmem:[%s1254_s19 + $0x80] sm:$0x33]  ;;  %v418_v9 = vld [vmem:[%s1464_s1 + $0x8] sm:$0xff] }
  0x18   : > { %v302_v27 = vadd.f32 %v248_v22, %v247_v21  ;;  %v252_v30 = vunpack.c.h.bf16 %v228_v24  ;;  %v257_v33 = vunpack.c.l.bf16 %v231_v31  ;;  %v258_v34 = vunpack.c.h.bf16 %v231_v31  ;;  %912 = vmatprep.mubr.msk.f32.mxu0 %vm419_vm3, %v418_v9  ;;  %v275_v10 = vld [vmem:[#allocation2 + $0x10] sm:$0xff]  ;;  %v273_v11 = vld [vmem:[#allocation2] sm:$0xff]  ;;  %v276_v16 = vld [vmem:[#allocation2 + $0x18] sm:$0xff] }
  0x19   : > { %v311_v35 = vadd.f32 %v254_v28, %v253_v26  ;;  %v255_v37 = vunpack.c.l.bf16 %v230_v32  ;;  %v256_v38 = vunpack.c.h.bf16 %v230_v32  ;;  %v261_v42 = vunpack.c.l.bf16 %v233_v39  ;;  %v274_v17 = vld [vmem:[#allocation2 + $0x8] sm:$0xff]  ;;  %v277_v23 = vld [vmem:[#allocation2 + $0x20] sm:$0xff]  ;;  %v280_v28 = vld [vmem:[#allocation2 + $0x38] sm:$0xff] }
  0x1a   : > { %v308_v36 = vadd.f32 %v252_v30, %v251_v29  ;;  %v317_v41 = vadd.f32 %v258_v34, %v257_v33  ;;  %v262_v44 = vunpack.c.h.bf16 %v233_v39  ;;  %v259_v45 = vunpack.c.l.bf16 %v232_v40  ;;  %v278_v22 = vld [vmem:[#allocation2 + $0x28] sm:$0xff]  ;;  %v279_v29 = vld [vmem:[#allocation2 + $0x30] sm:$0xff]  ;;  %v288_v9 = vld [vmem:[#allocation2 + $0x78] sm:$0xff] }
  0x1b   : > { %300 = vadd.xlane.f32.xlu1 %v299_v19  ;;  %294 = vadd.xlane.f32.xlu0 %v293_v20  ;;  %v314_v43 = vadd.f32 %v256_v38, %v255_v37  ;;  %v260_v46 = vunpack.c.h.bf16 %v232_v40  ;;  %v265_v49 = vunpack.c.l.bf16 %v235_v47  ;;  %v266_v50 = vunpack.c.h.bf16 %v235_v47  ;;  %v281_v38 = vld [vmem:[#allocation2 + $0x40] sm:$0xff] }
  0x1c   : > { %v323_v51 = vadd.f32 %v262_v44, %v261_v42  ;;  %v263_v53 = vunpack.c.l.bf16 %v234_v48  ;;  %v264_v54 = vunpack.c.h.bf16 %v234_v48  ;;  %v269_v59 = vunpack.c.l.bf16 %v237_v55 }
  0x1d   : > { %v320_v52 = vadd.f32 %v260_v46, %v259_v45  ;;  %v329_v58 = vadd.f32 %v266_v50, %v265_v49  ;;  %v270_v61 = vunpack.c.h.bf16 %v237_v55  ;;  %v267_v62 = vunpack.c.l.bf16 %v236_v56  ;;  %v284_v49 = vld [vmem:[#allocation2 + $0x58] sm:$0xff]  ;;  %v283_v50 = vld [vmem:[#allocation2 + $0x50] sm:$0xff] }
  0x1e   : > { %v326_v60 = vadd.f32 %v264_v54, %v263_v53  ;;  %v268_v63 = vunpack.c.h.bf16 %v236_v56  ;;  %v271_v1 = vunpack.c.l.bf16 %v238_v57  ;;  %v272_v2 = vunpack.c.h.bf16 %v238_v57 }
  0x1f   : > { %306 = vadd.xlane.f32.xlu1 %v305_v25  ;;  %303 = vadd.xlane.f32.xlu0 %v302_v27  ;;  %v335_v3 = vadd.f32 %v270_v61, %v269_v59  ;;  %v1167_v8 = vmov 0.0|0.0   ;;  %v285_v61 = vld [vmem:[#allocation2 + $0x60] sm:$0xff] }
  0x20   : > { %v332_v4 = vadd.f32 %v268_v63, %v267_v62  ;;  %v339_v5 = vsel %vm338_vm1, %v271_v1, 0.0  ;;  %v340_v6 = vsel %vm338_vm1, %v272_v2, 0.0  ;;  %1020 = vmatprep.subr.bf16.mxu0 %v1167_v8 }
  0x21   : > { %v341_v7 = vadd.f32 %v340_v6, %v339_v5 }
  0x23   : > { %312 = vadd.xlane.f32.xlu1 %v311_v35  ;;  %309 = vadd.xlane.f32.xlu0 %v308_v36  ;;  %v282_v35 = vld [vmem:[#allocation2 + $0x48] sm:$0xff] }
  0x27   : > { %318 = vadd.xlane.f32.xlu1 %v317_v41  ;;  %315 = vadd.xlane.f32.xlu0 %v314_v43 }
  0x2b   : > { %324 = vadd.xlane.f32.xlu1 %v323_v51  ;;  %321 = vadd.xlane.f32.xlu0 %v320_v52 }
  0x2f   : > { %330 = vadd.xlane.f32.xlu1 %v329_v58  ;;  %327 = vadd.xlane.f32.xlu0 %v326_v60  ;;  %v286_v60 = vld [vmem:[#allocation2 + $0x68] sm:$0xff] }
  0x33   : > { %336 = vadd.xlane.f32.xlu1 %v335_v3  ;;  %333 = vadd.xlane.f32.xlu0 %v332_v4 }
  0x37   : > { %342 = vadd.xlane.f32.xlu0 %v341_v7 }
  0xa4   : > { %v298_v12 = vpop.xlane.xlu1 %297  ;;  %v292_v13 = vpop.xlane.xlu0 %291 }
  0xa5   : > { %v346_v14 = vadd.f32 %v298_v12, %v275_v10  ;;  %v344_v15 = vadd.f32 %v292_v13, %v273_v11  ;;  %v287_v10 = vld [vmem:[#allocation2 + $0x70] sm:$0xff] }
  0xa7   : > { %364 = vst.msk [vmem:[#allocation2 + $0x10] sm:$0xff] %vm203_vm0, %v346_v14  ;;  %362 = vst.msk [vmem:[#allocation2] sm:$0xff] %vm203_vm0, %v344_v15 }
  0xa8   : > { %v301_v18 = vpop.xlane.xlu1 %300  ;;  %v295_v19 = vpop.xlane.xlu0 %294 }
  0xa9   : > { %v347_v20 = vadd.f32 %v301_v18, %v276_v16  ;;  %v345_v21 = vadd.f32 %v295_v19, %v274_v17 }
  0xab   : > { %365 = vst.msk [vmem:[#allocation2 + $0x18] sm:$0xff] %vm203_vm0, %v347_v20  ;;  %363 = vst.msk [vmem:[#allocation2 + $0x8] sm:$0xff] %vm203_vm0, %v345_v21  ;;  %v289_v20 = vld [vmem:[#allocation2 + $0x80] sm:$0x7] }
  0xac   : > { %v307_v24 = vpop.xlane.xlu1 %306  ;;  %v304_v25 = vpop.xlane.xlu0 %303 }
  0xad   : > { %v349_v26 = vadd.f32 %v307_v24, %v278_v22  ;;  %v348_v27 = vadd.f32 %v304_v25, %v277_v23 }
  0xae   : > { %v383_v32 = vld [vmem:[#allocation2] sm:$0xff]  ;;  %v385_v36 = vld [vmem:[#allocation2 + $0x10] sm:$0xff] }
  0xaf   : > { %367 = vst.msk [vmem:[#allocation2 + $0x28] sm:$0xff] %vm203_vm0, %v349_v26  ;;  %366 = vst.msk [vmem:[#allocation2 + $0x20] sm:$0xff] %vm203_vm0, %v348_v27  ;;  %v400_v40 = vmul.f32 0.00390625, %v383_v32  ;;  %v402_v44 = vmul.f32 0.00390625, %v385_v36 }
  0xb0   : > { %v313_v30 = vpop.xlane.xlu1 %312  ;;  %v310_v31 = vpop.xlane.xlu0 %309 }
  0xb1   : > { %v351_v33 = vadd.f32 %v313_v30, %v280_v28  ;;  %v350_v34 = vadd.f32 %v310_v31, %v279_v29 }
  0xb2   : > { %v384_v37 = vld [vmem:[#allocation2 + $0x8] sm:$0xff]  ;;  %v386_v39 = vld [vmem:[#allocation2 + $0x18] sm:$0xff] }
  0xb3   : > { %369 = vst.msk [vmem:[#allocation2 + $0x38] sm:$0xff] %vm203_vm0, %v351_v33  ;;  %368 = vst.msk [vmem:[#allocation2 + $0x30] sm:$0xff] %vm203_vm0, %v350_v34  ;;  %v401_v41 = vmul.f32 0.00390625, %v384_v37  ;;  %v403_v48 = vmul.f32 0.00390625, %v386_v39 }
  0xb4   : > { %v319_v42 = vpop.xlane.xlu1 %318  ;;  %v316_v43 = vpop.xlane.xlu0 %315 }
  0xb5   : > { %v1021_v45 = vpack.c.bf16 %v401_v41, %v400_v40  ;;  %v353_v46 = vadd.f32 %v319_v42, %v282_v35  ;;  %v352_v47 = vadd.f32 %v316_v43, %v281_v38  ;;  %v1024_v57 = vpack.c.bf16 %v403_v48, %v402_v44  ;;  %v417_v41 = vld [vmem:[%s1464_s1] sm:$0xff]  ;;  %v503_v48 = vld [vmem:[%s1465_s2 + $0x30] sm:$0xff] }
  0xb6   : > { %v387_v51 = vld [vmem:[#allocation2 + $0x20] sm:$0xff]  ;;  %v388_v52 = vld [vmem:[#allocation2 + $0x28] sm:$0xff] }
  0xb7   : > { %1022 = vmatpush1.bf16.msra.mxu0 %v1021_v45  ;;  %371 = vst.msk [vmem:[#allocation2 + $0x48] sm:$0xff] %vm203_vm0, %v353_v46  ;;  %370 = vst.msk [vmem:[#allocation2 + $0x40] sm:$0xff] %vm203_vm0, %v352_v47  ;;  %v404_v53 = vmul.f32 0.00390625, %v387_v51  ;;  %v405_v54 = vmul.f32 0.00390625, %v388_v52  ;;  %v501_v44 = vld [vmem:[%s1465_s2 + $0x20] sm:$0xff]  ;;  %v502_v46 = vld [vmem:[%s1465_s2 + $0x28] sm:$0xff] }
  0xb8   : > { %1023 = vmatprep.subr.bf16.mxu0 %v1167_v8  ;;  %v325_v55 = vpop.xlane.xlu1 %324  ;;  %v322_v56 = vpop.xlane.xlu0 %321  ;;  %v497_v45 = vld [vmem:[%s1465_s2] sm:$0xff]  ;;  %v498_v47 = vld [vmem:[%s1465_s2 + $0x8] sm:$0xff]  ;;  %v500_v51 = vld [vmem:[%s1465_s2 + $0x18] sm:$0xff] }
  0xb9   : > { %v355_v58 = vadd.f32 %v325_v55, %v284_v49  ;;  %v354_v59 = vadd.f32 %v322_v56, %v283_v50  ;;  %v1027_v1 = vpack.c.bf16 %v405_v54, %v404_v53  ;;  %v499_v49 = vld [vmem:[%s1465_s2 + $0x10] sm:$0xff]  ;;  %v504_v50 = vld [vmem:[%s1465_s2 + $0x38] sm:$0xff]  ;;  %v505_v52 = vld [vmem:[%s1465_s2 + $0x40] sm:$0xff] }
  0xba   : > { %v389_v62 = vld [vmem:[#allocation2 + $0x30] sm:$0xff]  ;;  %v390_v63 = vld [vmem:[#allocation2 + $0x38] sm:$0xff]  ;;  %v506_v53 = vld [vmem:[%s1465_s2 + $0x48] sm:$0xff] }
  0xbb   : > { %1025 = vmatpush1.bf16.msra.mxu0 %v1024_v57  ;;  %373 = vst.msk [vmem:[#allocation2 + $0x58] sm:$0xff] %vm203_vm0, %v355_v58  ;;  %372 = vst.msk [vmem:[#allocation2 + $0x50] sm:$0xff] %vm203_vm0, %v354_v59  ;;  %v406_v2 = vmul.f32 0.00390625, %v389_v62  ;;  %v407_v3 = vmul.f32 0.00390625, %v390_v63  ;;  %v507_v54 = vld [vmem:[%s1465_s2 + $0x50] sm:$0xff]  ;;  %v508_v55 = vld [vmem:[%s1465_s2 + $0x58] sm:$0xff] }
  0xbc   : > { %1026 = vmatprep.subr.bf16.mxu0 %v1167_v8  ;;  %v331_v4 = vpop.xlane.xlu1 %330  ;;  %v328_v5 = vpop.xlane.xlu0 %327  ;;  %v509_v56 = vld [vmem:[%s1465_s2 + $0x60] sm:$0xff]  ;;  %v510_v57 = vld [vmem:[%s1465_s2 + $0x68] sm:$0xff]  ;;  %v511_v58 = vld [vmem:[%s1465_s2 + $0x70] sm:$0xff] }
  0xbd   : > { %v357_v6 = vadd.f32 %v331_v4, %v286_v60  ;;  %v356_v7 = vadd.f32 %v328_v5, %v285_v61  ;;  %v1030_v13 = vpack.c.bf16 %v407_v3, %v406_v2  ;;  %v512_v59 = vld [vmem:[%s1465_s2 + $0x78] sm:$0xff]  ;;  %v513_v60 = vld [vmem:[%s1465_s2 + $0x80] sm:$0x7] }
  0xbe   : > { %v391_v11 = vld [vmem:[#allocation2 + $0x40] sm:$0xff]  ;;  %v392_v12 = vld [vmem:[#allocation2 + $0x48] sm:$0xff] }
  0xbf   : > { %1028 = vmatpush1.bf16.msra.mxu0 %v1027_v1  ;;  %375 = vst.msk [vmem:[#allocation2 + $0x68] sm:$0xff] %vm203_vm0, %v357_v6  ;;  %374 = vst.msk [vmem:[#allocation2 + $0x60] sm:$0xff] %vm203_vm0, %v356_v7  ;;  %v408_v14 = vmul.f32 0.00390625, %v391_v11  ;;  %v409_v15 = vmul.f32 0.00390625, %v392_v12 }
  0xc0   : > { %1029 = vmatprep.subr.bf16.mxu0 %v1167_v8  ;;  %v337_v16 = vpop.xlane.xlu1 %336  ;;  %v334_v17 = vpop.xlane.xlu0 %333 }
  0xc1   : > { %v359_v18 = vadd.f32 %v337_v16, %v288_v9  ;;  %v358_v19 = vadd.f32 %v334_v17, %v287_v10  ;;  %v1033_v23 = vpack.c.bf16 %v409_v15, %v408_v14 }
  0xc2   : > { %v393_v21 = vld [vmem:[#allocation2 + $0x50] sm:$0xff]  ;;  %v394_v22 = vld [vmem:[#allocation2 + $0x58] sm:$0xff] }
  0xc3   : > { %1031 = vmatpush1.bf16.msra.mxu0 %v1030_v13  ;;  %377 = vst.msk [vmem:[#allocation2 + $0x78] sm:$0xff] %vm203_vm0, %v359_v18  ;;  %376 = vst.msk [vmem:[#allocation2 + $0x70] sm:$0xff] %vm203_vm0, %v358_v19  ;;  %v410_v24 = vmul.f32 0.00390625, %v393_v21  ;;  %v411_v25 = vmul.f32 0.00390625, %v394_v22 }
  0xc4   : > { %1032 = vmatprep.subr.bf16.mxu0 %v1167_v8  ;;  %v343_v26 = vpop.xlane.xlu0 %342 }
  0xc5   : > { %v360_v27 = vadd.f32 %v343_v26, %v289_v20  ;;  %v1036_v30 = vpack.c.bf16 %v411_v25, %v410_v24 }
  0xc6   : > { %v395_v28 = vld [vmem:[#allocation2 + $0x60] sm:$0xff]  ;;  %v396_v29 = vld [vmem:[#allocation2 + $0x68] sm:$0xff] }
  0xc7   : > { %1034 = vmatpush1.bf16.msra.mxu0 %v1033_v23  ;;  %379 = vst.msk [vmem:[#allocation2 + $0x80] sm:$0x7] %vm220_vm2, %v360_v27  ;;  %v412_v31 = vmul.f32 0.00390625, %v395_v28  ;;  %v413_v32 = vmul.f32 0.00390625, %v396_v29 }
  0xc8   : > { %1035 = vmatprep.subr.bf16.mxu0 %v1167_v8 }
  0xc9   : > { %v1039_v35 = vpack.c.bf16 %v413_v32, %v412_v31 }
  0xca   : > { %v397_v33 = vld [vmem:[#allocation2 + $0x70] sm:$0xff]  ;;  %v398_v34 = vld [vmem:[#allocation2 + $0x78] sm:$0xff] }
  0xcb   : > { %1037 = vmatpush1.bf16.msra.mxu0 %v1036_v30  ;;  %v414_v36 = vmul.f32 0.00390625, %v397_v33  ;;  %v415_v37 = vmul.f32 0.00390625, %v398_v34 }
  0xcc   : > { %1038 = vmatprep.subr.bf16.mxu0 %v1167_v8 }
  0xcd   : > { %v1042_v38 = vpack.c.bf16 %v415_v37, %v414_v36 }
  0xce   : > { %v399_v39 = vld [vmem:[#allocation2 + $0x80] sm:$0x7] }
  0xcf   : > { %1040 = vmatpush1.bf16.msra.mxu0 %v1039_v35  ;;  %v416_v40 = vmul.f32 0.00390625, %v399_v39 }
  0xd0   : > { %1041 = vmatprep.subr.bf16.mxu0 %v1167_v8 }
  0xd3   : > { %1043 = vmatpush1.bf16.msra.mxu0 %v1042_v38 }
  0xd4   : > { %458 = vmatprep.subr.mxu0 %v1166_v0 }
  0xd7   : > { %911 = vmatpush1.msk.msra.mxu0 %vm338_vm1, %v416_v40 }
  0xd8   : > { %491 = vmatmul.mubr.f32.vlgmr.msra.gmra.mrb[0].mxu0 %v417_v41  ;;  %967 = vmatprep.subr.mxu0 %v1166_v0 }
  0xd9   : > { %969 = vmatprep.mubr.msk.f32.mxu0 %vm1168_vm4, %v1166_v0 }
 0x1ab   : > { %v492_v8 = vpop.f32.mrb[0].mxu0 }
 0x1ac   : > { %v496_v42 = vmax.f32 %v492_v8, 0.0  ;;  %v494_v43 = vpop.f32.mrb[1].mxu0 }
 0x1ae   : > { %968 = vmatpush3.msra.mxu0 %v496_v42  ;;  %1045 = vmatpush3.msra.mxu1 %v496_v42 }
 0x1af   : > { %982 = vmatmul.mubr.msk.f32.vlgmr.msra.gmra.mrb[0].mxu1 %vm514_vm5, %v501_v44  ;;  %970 = vmatmul.mubr.msk.f32.vlgmr.msra.gmra.mrb[2].mxu0 %vm514_vm5, %v497_v45 }
 0x1b0   : > { %984 = vmatprep.mubr.msk.f32.mxu1 %vm1168_vm4, %v1166_v0  ;;  %972 = vmatprep.mubr.msk.f32.mxu0 %vm1168_vm4, %v1166_v0 }
 0x1b3   : > { %985 = vmatmul.mubr.msk.f32.gmra.mrb[2].mxu1 %vm514_vm5, %v502_v46  ;;  %973 = vmatmul.mubr.msk.f32.gmra.mrb[4].mxu0 %vm514_vm5, %v498_v47 }
 0x1b4   : > { %987 = vmatprep.mubr.msk.f32.mxu1 %vm1168_vm4, %v1166_v0  ;;  %975 = vmatprep.mubr.msk.f32.mxu0 %vm1168_vm4, %v1166_v0 }
 0x1b7   : > { %988 = vmatmul.mubr.msk.f32.gmra.mrb[4].mxu1 %vm514_vm5, %v503_v48  ;;  %976 = vmatmul.mubr.msk.f32.gmra.mrb[6].mxu0 %vm514_vm5, %v499_v49 }
 0x1b8   : > { %990 = vmatprep.mubr.msk.f32.mxu1 %vm1168_vm4, %v1166_v0  ;;  %978 = vmatprep.mubr.msk.f32.mxu0 %vm1168_vm4, %v1166_v0 }
 0x1bb   : > { %991 = vmatmul.mubr.msk.f32.gmra.mrb[6].mxu1 %vm514_vm5, %v504_v50  ;;  %979 = vmatmul.mubr.msk.f32.gmra.mrb[8].mxu0 %vm514_vm5, %v500_v51 }
 0x1bc   : > { %993 = vmatprep.mubr.msk.f32.mxu1 %vm1168_vm4, %v1166_v0 }
 0x1bf   : > { %994 = vmatmul.mubr.msk.f32.gmra.mrb[8].mxu1 %vm514_vm5, %v505_v52 }
 0x1c0   : > { %996 = vmatprep.mubr.msk.f32.mxu1 %vm1168_vm4, %v1166_v0 }
 0x1c3   : > { %997 = vmatmul.mubr.msk.f32.gmra.mrb[10].mxu1 %vm514_vm5, %v506_v53 }
 0x1c4   : > { %999 = vmatprep.mubr.msk.f32.mxu1 %vm1168_vm4, %v1166_v0 }
 0x1c7   : > { %1000 = vmatmul.mubr.msk.f32.gmra.mrb[12].mxu1 %vm514_vm5, %v507_v54 }
 0x1c8   : > { %1002 = vmatprep.mubr.msk.f32.mxu1 %vm1168_vm4, %v1166_v0 }
 0x1cb   : > { %1003 = vmatmul.mubr.msk.f32.gmra.mrb[14].mxu1 %vm514_vm5, %v508_v55 }
 0x1cc   : > { %1005 = vmatprep.mubr.msk.f32.mxu1 %vm1168_vm4, %v1166_v0 }
 0x1cf   : > { %1006 = vmatmul.mubr.msk.f32.gmra.mrb[16].mxu1 %vm514_vm5, %v509_v56 }
 0x1d0   : > { %1008 = vmatprep.mubr.msk.f32.mxu1 %vm1168_vm4, %v1166_v0 }
 0x1d3   : > { %1009 = vmatmul.mubr.msk.f32.gmra.mrb[18].mxu1 %vm514_vm5, %v510_v57 }
 0x1d4   : > { %1011 = vmatprep.mubr.msk.f32.mxu1 %vm1168_vm4, %v1166_v0 }
 0x1d7   : > { %1012 = vmatmul.mubr.msk.f32.gmra.mrb[20].mxu1 %vm514_vm5, %v511_v58 }
 0x1d8   : > { %1014 = vmatprep.mubr.msk.f32.mxu1 %vm1168_vm4, %v1166_v0 }
 0x1db   : > { %1015 = vmatmul.mubr.msk.f32.gmra.mrb[22].mxu1 %vm514_vm5, %v512_v59 }
 0x1dc   : > { %1017 = vmatprep.mubr.msk.f32.mxu1 %vm1168_vm4, %v1166_v0 }
 0x1df   : > { %1018 = vmatmul.mubr.msk.f32.gmra.mrb[24].mxu1 %vm514_vm5, %v513_v60 }
 0x282   : > { %v652_v61 = vpop.f32.mrb[0].mxu1  ;;  %v632_v62 = vpop.f32.mrb[2].mxu0 }
 0x283   : > { %v934_v63 = vmul.f32 -1.442695, %v652_v61  ;;  %v983_v1 = vpop.f32.mrb[1].mxu1  ;;  %v930_v2 = vmul.f32 -1.442695, %v632_v62  ;;  %v971_v3 = vpop.f32.mrb[3].mxu0 }
 0x285   : > { %1074 = vpow2.f32 %v934_v63 }
 0x286   : > { %v657_v4 = vpop.f32.mrb[2].mxu1  ;;  %1076 = vpow2.f32 %v930_v2  ;;  %v637_v5 = vpop.f32.mrb[4].mxu0 }
 0x287   : > { %v935_v6 = vmul.f32 -1.442695, %v657_v4  ;;  %v986_v7 = vpop.f32.mrb[3].mxu1  ;;  %v931_v9 = vmul.f32 -1.442695, %v637_v5  ;;  %v974_v0 = vpop.f32.mrb[5].mxu0 }
 0x289   : > { %1078 = vpow2.f32 %v935_v6 }
 0x28a   : > { %v662_v10 = vpop.f32.mrb[4].mxu1  ;;  %1080 = vpow2.f32 %v931_v9  ;;  %v642_v11 = vpop.f32.mrb[6].mxu0 }
 0x28b   : > { %v936_v12 = vmul.f32 -1.442695, %v662_v10  ;;  %v989_v13 = vpop.f32.mrb[5].mxu1  ;;  %v932_v14 = vmul.f32 -1.442695, %v642_v11  ;;  %v977_v15 = vpop.f32.mrb[7].mxu0 }
 0x28d   : > { %1082 = vpow2.f32 %v936_v12 }
 0x28e   : > { %v667_v16 = vpop.f32.mrb[6].mxu1  ;;  %1084 = vpow2.f32 %v932_v14  ;;  %v647_v17 = vpop.f32.mrb[8].mxu0 }
 0x28f   : > { %v1075_v18 = vpop.eup %1074  ;;  %v937_v19 = vmul.f32 -1.442695, %v667_v16  ;;  %v992_v20 = vpop.f32.mrb[7].mxu1  ;;  %v933_v24 = vmul.f32 -1.442695, %v647_v17 }
 0x290   : > { %v980_v21 = vpop.f32.mrb[9].mxu0  ;;  %v1077_v22 = vpop.eup %1076  ;;  %v771_v23 = vadd.f32 1.0, %v1075_v18 }
 0x291   : > { %1086 = vpow2.f32 %v937_v19  ;;  %v767_v25 = vadd.f32 1.0, %v1077_v22 }
 0x292   : > { %1088 = vrcp.f32 %v771_v23  ;;  %v672_v26 = vpop.f32.mrb[8].mxu1 }
 0x293   : > { %v1079_v27 = vpop.eup %1078  ;;  %v938_v28 = vmul.f32 -1.442695, %v672_v26  ;;  %v995_v29 = vpop.f32.mrb[9].mxu1  ;;  %1090 = vrcp.f32 %v767_v25 }
 0x294   : > { %v1081_v30 = vpop.eup %1080  ;;  %v772_v31 = vadd.f32 1.0, %v1079_v27  ;;  %1092 = vpow2.f32 %v933_v24 }
 0x295   : > { %1094 = vpow2.f32 %v938_v28  ;;  %v768_v32 = vadd.f32 1.0, %v1081_v30 }
 0x296   : > { %1096 = vrcp.f32 %v772_v31  ;;  %v677_v33 = vpop.f32.mrb[10].mxu1 }
 0x297   : > { %v1083_v34 = vpop.eup %1082  ;;  %v939_v35 = vmul.f32 -1.442695, %v677_v33  ;;  %v998_v36 = vpop.f32.mrb[11].mxu1  ;;  %1098 = vrcp.f32 %v768_v32 }
 0x298   : > { %v1085_v37 = vpop.eup %1084  ;;  %v773_v38 = vadd.f32 1.0, %v1083_v34 }
 0x299   : > { %1100 = vpow2.f32 %v939_v35  ;;  %v769_v39 = vadd.f32 1.0, %v1085_v37 }
 0x29a   : > { %1102 = vrcp.f32 %v773_v38  ;;  %v682_v40 = vpop.f32.mrb[12].mxu1 }
 0x29b   : > { %v1087_v41 = vpop.eup %1086  ;;  %v940_v8 = vmul.f32 -1.442695, %v682_v40  ;;  %v1001_v42 = vpop.f32.mrb[13].mxu1  ;;  %1104 = vrcp.f32 %v769_v39 }
 0x29c   : > { %v1089_v43 = vpop.eup %1088  ;;  %v774_v44 = vadd.f32 1.0, %v1087_v41 }
 0x29d   : > { %v1091_v45 = vpop.eup %1090  ;;  %822 = vst.msk [vmem:[%s1418_s11 + $0x20] sm:$0xff] %vm203_vm0, %v1089_v43  ;;  %1106 = vpow2.f32 %v940_v8 }
 0x29e   : > { %v1093_v46 = vpop.eup %1092  ;;  %1108 = vrcp.f32 %v774_v44  ;;  %v687_v47 = vpop.f32.mrb[14].mxu1  ;;  %818 = vst.msk [vmem:[%s1418_s11] sm:$0xff] %vm203_vm0, %v1091_v45 }
 0x29f   : > { %v1095_v48 = vpop.eup %1094  ;;  %v941_v49 = vmul.f32 -1.442695, %v687_v47  ;;  %v1004_v50 = vpop.f32.mrb[15].mxu1  ;;  %v770_v51 = vadd.f32 1.0, %v1093_v46 }
 0x2a0   : > { %v1097_v52 = vpop.eup %1096  ;;  %v775_v53 = vadd.f32 1.0, %v1095_v48 }
 0x2a1   : > { %v1099_v54 = vpop.eup %1098  ;;  %823 = vst.msk [vmem:[%s1418_s11 + $0x28] sm:$0xff] %vm203_vm0, %v1097_v52  ;;  %1110 = vpow2.f32 %v941_v49 }
 0x2a2   : > { %1112 = vrcp.f32 %v775_v53  ;;  %v692_v55 = vpop.f32.mrb[16].mxu1  ;;  %819 = vst.msk [vmem:[%s1418_s11 + $0x8] sm:$0xff] %vm203_vm0, %v1099_v54 }
 0x2a3   : > { %v1101_v56 = vpop.eup %1100  ;;  %v942_v57 = vmul.f32 -1.442695, %v692_v55  ;;  %v1007_v58 = vpop.f32.mrb[17].mxu1  ;;  %1114 = vrcp.f32 %v770_v51 }
 0x2a4   : > { %v1103_v59 = vpop.eup %1102  ;;  %v776_v60 = vadd.f32 1.0, %v1101_v56 }
 0x2a5   : > { %v1105_v61 = vpop.eup %1104  ;;  %824 = vst.msk [vmem:[%s1418_s11 + $0x30] sm:$0xff] %vm203_vm0, %v1103_v59  ;;  %1116 = vpow2.f32 %v942_v57 }
 0x2a6   : > { %1118 = vrcp.f32 %v776_v60  ;;  %v697_v62 = vpop.f32.mrb[18].mxu1  ;;  %820 = vst.msk [vmem:[%s1418_s11 + $0x10] sm:$0xff] %vm203_vm0, %v1105_v61 }
 0x2a7   : > { %v1107_v63 = vpop.eup %1106  ;;  %v943_v1 = vmul.f32 -1.442695, %v697_v62  ;;  %v1010_v2 = vpop.f32.mrb[19].mxu1 }
 0x2a8   : > { %v1109_v3 = vpop.eup %1108  ;;  %v777_v4 = vadd.f32 1.0, %v1107_v63 }
 0x2a9   : > { %825 = vst.msk [vmem:[%s1418_s11 + $0x38] sm:$0xff] %vm203_vm0, %v1109_v3  ;;  %1120 = vpow2.f32 %v943_v1 }
 0x2aa   : > { %1122 = vrcp.f32 %v777_v4  ;;  %v702_v5 = vpop.f32.mrb[20].mxu1 }
 0x2ab   : > { %v1111_v6 = vpop.eup %1110  ;;  %v944_v7 = vmul.f32 -1.442695, %v702_v5  ;;  %v1013_v9 = vpop.f32.mrb[21].mxu1 }
 0x2ac   : > { %v1113_v0 = vpop.eup %1112  ;;  %v778_v10 = vadd.f32 1.0, %v1111_v6 }
 0x2ad   : > { %v1115_v11 = vpop.eup %1114  ;;  %826 = vst.msk [vmem:[%s1418_s11 + $0x40] sm:$0xff] %vm203_vm0, %v1113_v0  ;;  %1124 = vpow2.f32 %v944_v7 }
 0x2ae   : > { %1126 = vrcp.f32 %v778_v10  ;;  %v707_v12 = vpop.f32.mrb[22].mxu1  ;;  %821 = vst.msk [vmem:[%s1418_s11 + $0x18] sm:$0xff] %vm203_vm0, %v1115_v11 }
 0x2af   : > { %v1117_v13 = vpop.eup %1116  ;;  %v945_v14 = vmul.f32 -1.442695, %v707_v12  ;;  %v1016_v15 = vpop.f32.mrb[23].mxu1 }
 0x2b0   : > { %v1119_v16 = vpop.eup %1118  ;;  %v779_v17 = vadd.f32 1.0, %v1117_v13 }
 0x2b1   : > { %827 = vst.msk [vmem:[%s1418_s11 + $0x48] sm:$0xff] %vm203_vm0, %v1119_v16  ;;  %1128 = vpow2.f32 %v945_v14 }
 0x2b2   : > { %1130 = vrcp.f32 %v779_v17  ;;  %v712_v18 = vpop.f32.mrb[24].mxu1 }
 0x2b3   : > { %v1121_v19 = vpop.eup %1120  ;;  %v946_v20 = vmul.f32 -1.442695, %v712_v18  ;;  %v1019_v21 = vpop.f32.mrb[25].mxu1 }
 0x2b4   : > { %v1123_v22 = vpop.eup %1122  ;;  %v780_v23 = vadd.f32 1.0, %v1121_v19 }
 0x2b5   : > { %828 = vst.msk [vmem:[%s1418_s11 + $0x50] sm:$0xff] %vm203_vm0, %v1123_v22  ;;  %1132 = vpow2.f32 %v946_v20 }
 0x2b6   : > { %1134 = vrcp.f32 %v780_v23 }
 0x2b7   : > { %v1125_v24 = vpop.eup %1124 }
 0x2b8   : > { %v1127_v25 = vpop.eup %1126  ;;  %v781_v26 = vadd.f32 1.0, %v1125_v24 }
 0x2b9   : > { %829 = vst.msk [vmem:[%s1418_s11 + $0x58] sm:$0xff] %vm203_vm0, %v1127_v25 }
 0x2ba   : > { %1136 = vrcp.f32 %v781_v26 }
 0x2bb   : > { %v1129_v27 = vpop.eup %1128 }
 0x2bc   : > { %v1131_v28 = vpop.eup %1130  ;;  %v782_v29 = vadd.f32 1.0, %v1129_v27 }
 0x2bd   : > { %830 = vst.msk [vmem:[%s1418_s11 + $0x60] sm:$0xff] %vm203_vm0, %v1131_v28 }
 0x2be   : > { %1138 = vrcp.f32 %v782_v29 }
 0x2bf   : > { %v1133_v30 = vpop.eup %1132 }
 0x2c0   : > { %v1135_v31 = vpop.eup %1134  ;;  %v783_v32 = vadd.f32 1.0, %v1133_v30 }
 0x2c1   : > { %831 = vst.msk [vmem:[%s1418_s11 + $0x68] sm:$0xff] %vm203_vm0, %v1135_v31 }
 0x2c2   : > { %1140 = vrcp.f32 %v783_v32 }
 0x2c4   : > { %v1137_v33 = vpop.eup %1136 }
 0x2c5   : > { %832 = vst.msk [vmem:[%s1418_s11 + $0x70] sm:$0xff] %vm203_vm0, %v1137_v33 }
 0x2c8   : > { %v1139_v34 = vpop.eup %1138 }
 0x2c9   : > { %833 = vst.msk [vmem:[%s1418_s11 + $0x78] sm:$0xff] %vm203_vm0, %v1139_v34 }
 0x2cc   : > { %v1141_v35 = vpop.eup %1140 }
 0x2cd   : > { %834 = vst.msk [vmem:[%s1418_s11 + $0x80] sm:$0x7] %vm220_vm2, %v1141_v35 }
 0x2ce PF: > { %s13_s14 = sadd.s32 1, %s1164_s14   ;;  %s1467_s12 = smov %s1160_s13 }
 0x2cf   : > { %p10_p5 = scmp.ge.s32.totalorder %s13_s14, 4   ;;  %s1468_s13 = smov %s1470_s15 }
 0x2d1   :  { %12 = sbr.rel (!%p10_p5) target bundleno = 2 (0x2), region = 70 }

// kernel: cal_forward.3
= control target key start
LH: loop header
LB: loop body
LE: loop exit
PB: predicated region body
PF: predicated region fallthrough
CT: control target
= control target key end

     0   :  { %s1068_s12 = smov 0   ;;  %s1070_s13 = smov 0   ;;  %s1225_s0 = inlined_call_operand.vmem [shape: bf16[2,131,256], index: 0, kind: input, shape index: {}]   ;;  %s1226_s1 = inlined_call_operand.vmem [shape: f32[2,131,1], index: 1, kind: input, shape index: {}]   ;;  %s1227_s2 = inlined_call_operand.vmem [shape: bf16[128,131], index: 2, kind: input, shape index: {}]   ;;  %s1228_s3 = inlined_call_operand.vmem [shape: bf16[2,128,256], index: 3, kind: output, shape index: {}]  }
   0x1   :  { %s1072_s14 = smov 0  }
   0x2 LB: > { %s25_s15 = sadd.s32 1, %s1040_s13  ;;  %p887_p0 = scmp.ge.s32.totalorder %s1044_s14, 1  ;;  %s1044_s14 = sphi %s1072_s14, %s13_s14   ;;  %s1040_s13 = sphi %s1070_s13, %s1230_s13   ;;  %s1036_s12 = sphi %s1068_s12, %s1229_s12  }
   0x3   : > { %p27_p1 = scmp.ge.s32.totalorder %s25_s15, 2  ;;  %p168_p2 = scmp.lt.s32.totalorder %s1044_s14, 3 }
   0x5   : > { %s1232_s15 = smov (%p27_p1, %s25_s15), 0  ;;  %p169_p3 = pnand %p887_p0, %p168_p2 }
   0x6   : > { %p206_p4 = scmp.lt.s32.totalorder (!%p169_p3), %s1036_s12, 1  ;;  %v1046_v0 = vmov (!%p169_p3), 0   ;;  %v1000_v18 = vld [vmem:[%s1227_s2 + $0x4] ss:$8 sps:$4 sm:$0xff] (!%p169_p3)   ;;  %vm524_vm0 = vcmask (!%p169_p3), 23552   ;;  %vm549_vm1 = vcmask (!%p169_p3), 1040384  }
   0x7   : > { %172 = sbr.rel (%p169_p3) target bundleno = 433 (0x1b1), region = 32  ;;  %997 = vset.pattern.permute.xlu1 (!%p169_p3), %v1046_v0  ;;  %996 = vset.pattern.permute.xlu0 (!%p169_p3), %v1046_v0  ;;  %v1003_v19 = vld [vmem:[%s1227_s2 + $0x44] ss:$8 sps:$4 sm:$0xff] (!%p169_p3)   ;;  %vm550_vm2 = vcmask (!%p169_p3), 1041408  }
   0x8   : > { %908 = vmatprep.mubr.msk.bf16.mxu0 (!%p169_p3), %vm524_vm0, %v1000_v18  ;;  %912 = vmatprep.mubr.msk.bf16.mxu1 (!%p169_p3), %vm524_vm0, %v1003_v19 }
   0xe   : > { %s1234_s12 = smov (!%p206_p4, %s1036_s12), 1 }
   0xf   : > { %s969_s16 = smul.u32 136, %s1234_s12  ;;  %s934_s5 = sshll.u32 %s1234_s12, 7 }
  0x10   : > { %s1198_s8 = scalar_lea.vmem %s1228_s3, %s934_s5 }
  0x11   : > { %s1094_s19 = scalar_lea.vmem %s1226_s1, %s969_s16  ;;  %s1126_s26 = scalar_lea.vmem %s1225_s0, %s969_s16 }
  0x12   : > { %v250_v1 = vld [vmem:[%s1094_s19 + $0x10] sm:$0xff]  ;;  %v248_v2 = vld [vmem:[%s1094_s19] sm:$0xff]  ;;  %v251_v3 = vld [vmem:[%s1094_s19 + $0x18] sm:$0xff] }
  0x13   : > { %311 = vperm.xlu1 %997, %v250_v1   ;;  %301 = vperm.xlu0 %996, %v248_v2   ;;  %v249_v4 = vld [vmem:[%s1094_s19 + $0x8] sm:$0xff]  ;;  %v252_v6 = vld [vmem:[%s1094_s19 + $0x20] sm:$0xff]  ;;  %v255_v7 = vld [vmem:[%s1094_s19 + $0x38] sm:$0xff] }
  0x14   : > { %v253_v5 = vld [vmem:[%s1094_s19 + $0x28] sm:$0xff]  ;;  %v254_v8 = vld [vmem:[%s1094_s19 + $0x30] sm:$0xff]  ;;  %v256_v10 = vld [vmem:[%s1094_s19 + $0x40] sm:$0xff] }
  0x15   : > { %v257_v9 = vld [vmem:[%s1094_s19 + $0x48] sm:$0xff]  ;;  %v259_v11 = vld [vmem:[%s1094_s19 + $0x58] sm:$0xff]  ;;  %v258_v12 = vld [vmem:[%s1094_s19 + $0x50] sm:$0xff] }
  0x16   : > { %v261_v13 = vld [vmem:[%s1094_s19 + $0x68] sm:$0xff]  ;;  %v260_v14 = vld [vmem:[%s1094_s19 + $0x60] sm:$0xff]  ;;  %v263_v15 = vld [vmem:[%s1094_s19 + $0x78] sm:$0xff] }
  0x17   : > { %316 = vperm.xlu1 %997, %v251_v3   ;;  %306 = vperm.xlu0 %996, %v249_v4   ;;  %v262_v16 = vld [vmem:[%s1094_s19 + $0x70] sm:$0xff]  ;;  %v264_v17 = vld [vmem:[%s1094_s19 + $0x80] sm:$0x7]  ;;  %v234_v22 = vld [vmem:[%s1126_s26 + $0x18] sm:$0xff] }
  0x18   : > { %v233_v20 = vld [vmem:[%s1126_s26 + $0x10] sm:$0xff]  ;;  %v231_v21 = vld [vmem:[%s1126_s26] sm:$0xff]  ;;  %v232_v23 = vld [vmem:[%s1126_s26 + $0x8] sm:$0xff]  ;;  %v272_v29 = vunpack.c.h.bf16 %v234_v22  ;;  %v271_v35 = vunpack.c.l.bf16 %v234_v22 }
  0x19   : > { %v270_v25 = vunpack.c.h.bf16 %v233_v20  ;;  %v265_v27 = vunpack.c.l.bf16 %v231_v21  ;;  %v266_v28 = vunpack.c.h.bf16 %v231_v21  ;;  %v267_v30 = vunpack.c.l.bf16 %v232_v23  ;;  %v236_v32 = vld [vmem:[%s1126_s26 + $0x28] sm:$0xff]  ;;  %v235_v33 = vld [vmem:[%s1126_s26 + $0x20] sm:$0xff]  ;;  %v238_v46 = vld [vmem:[%s1126_s26 + $0x38] sm:$0xff] }
  0x1a   : > { %v268_v31 = vunpack.c.h.bf16 %v232_v23  ;;  %v269_v34 = vunpack.c.l.bf16 %v233_v20  ;;  %v276_v40 = vunpack.c.h.bf16 %v236_v32  ;;  %v274_v41 = vunpack.c.h.bf16 %v235_v33  ;;  %v237_v47 = vld [vmem:[%s1126_s26 + $0x30] sm:$0xff]  ;;  %v240_v61 = vld [vmem:[%s1126_s26 + $0x48] sm:$0xff]  ;;  %v239_v62 = vld [vmem:[%s1126_s26 + $0x40] sm:$0xff] }
  0x1b   : > { %326 = vperm.xlu1 %997, %v253_v5   ;;  %321 = vperm.xlu0 %996, %v252_v6   ;;  %v275_v48 = vunpack.c.l.bf16 %v236_v32  ;;  %v273_v55 = vunpack.c.l.bf16 %v235_v33  ;;  %v280_v56 = vunpack.c.h.bf16 %v238_v46  ;;  %v278_v60 = vunpack.c.h.bf16 %v237_v47 }
  0x1c   : > { %v279_v63 = vunpack.c.l.bf16 %v238_v46  ;;  %v277_v0 = vunpack.c.l.bf16 %v237_v47  ;;  %v284_v6 = vunpack.c.h.bf16 %v240_v61 }
  0x1f   : > { %336 = vperm.xlu1 %997, %v255_v7   ;;  %331 = vperm.xlu0 %996, %v254_v8  }
  0x23   : > { %346 = vperm.xlu1 %997, %v257_v9   ;;  %341 = vperm.xlu0 %996, %v256_v10   ;;  %v282_v10 = vunpack.c.h.bf16 %v239_v62 }
  0x27   : > { %356 = vperm.xlu1 %997, %v259_v11   ;;  %351 = vperm.xlu0 %996, %v258_v12   ;;  %v242_v11 = vld [vmem:[%s1126_s26 + $0x58] sm:$0xff]  ;;  %v241_v12 = vld [vmem:[%s1126_s26 + $0x50] sm:$0xff] }
  0x28   : > { %v288_v20 = vunpack.c.h.bf16 %v242_v11 }
  0x2b   : > { %366 = vperm.xlu1 %997, %v261_v13   ;;  %361 = vperm.xlu0 %996, %v260_v14   ;;  %v283_v13 = vunpack.c.l.bf16 %v240_v61  ;;  %v281_v14 = vunpack.c.l.bf16 %v239_v62 }
  0x2f   : > { %376 = vperm.xlu1 %997, %v263_v15   ;;  %371 = vperm.xlu0 %996, %v262_v16  }
  0x33   : > { %381 = vperm.xlu0 %996, %v264_v17  }
  0x92   : > { %v312_v24 = vpop.permute.xlu1 %311  ;;  %v302_v26 = vpop.permute.xlu0 %301 }
  0x93   : > { %v389_v36 = vmul.f32 %v312_v24, %v270_v25  ;;  %v384_v37 = vmul.f32 %v302_v26, %v265_v27  ;;  %v385_v42 = vmul.f32 %v302_v26, %v266_v28  ;;  %v388_v51 = vmul.f32 %v312_v24, %v269_v34  ;;  %v244_v25 = vld [vmem:[%s1126_s26 + $0x68] sm:$0xff]  ;;  %v243_v26 = vld [vmem:[%s1126_s26 + $0x60] sm:$0xff] }
  0x94   : > { %v286_v24 = vunpack.c.h.bf16 %v241_v12  ;;  %v287_v27 = vunpack.c.l.bf16 %v242_v11  ;;  %v285_v28 = vunpack.c.l.bf16 %v241_v12  ;;  %v292_v34 = vunpack.c.h.bf16 %v244_v25 }
  0x96   : > { %v317_v38 = vpop.permute.xlu1 %316  ;;  %v307_v39 = vpop.permute.xlu0 %306 }
  0x97   : > { %v391_v43 = vmul.f32 %v317_v38, %v272_v29  ;;  %v386_v44 = vmul.f32 %v307_v39, %v267_v30  ;;  %v387_v45 = vmul.f32 %v307_v39, %v268_v31  ;;  %v390_v52 = vmul.f32 %v317_v38, %v271_v35  ;;  %v246_v39 = vld [vmem:[%s1126_s26 + $0x78] sm:$0xff] }
  0x98   : > { %v290_v38 = vunpack.c.h.bf16 %v243_v26 }
  0x99   : > { %v419_v49 = vpack.c.bf16 %v387_v45, %v385_v42  ;;  %v418_v50 = vpack.c.bf16 %v386_v44, %v384_v37  ;;  %v421_v57 = vpack.c.bf16 %v391_v43, %v389_v36  ;;  %v420_v1 = vpack.c.bf16 %v390_v52, %v388_v51 }
  0x9a   : > { %v327_v53 = vpop.permute.xlu1 %326  ;;  %v322_v54 = vpop.permute.xlu0 %321  ;;  %v289_v42 = vunpack.c.l.bf16 %v243_v26  ;;  %v1015_v26 = vld [vmem:[%s1227_s2 + $0x60] ss:$8 sps:$4 sm:$0xff]  }
  0x9b   : > { %v395_v58 = vmul.f32 %v327_v53, %v276_v40  ;;  %v393_v59 = vmul.f32 %v322_v54, %v274_v41  ;;  %559 = vmatprep.subr.bf16.mxu0 %v419_v49  ;;  %951 = vmatprep.subr.bf16.mxu1 %v419_v49  ;;  %v394_v2 = vmul.f32 %v327_v53, %v275_v48  ;;  %v245_v40 = vld [vmem:[%s1126_s26 + $0x70] sm:$0xff]  ;;  %v291_v41 = vunpack.c.l.bf16 %v244_v25  ;;  %v247_v53 = vld [vmem:[%s1126_s26 + $0x80] sm:$0x33] }
  0x9c   : > { %560 = vmatpush1.bf16.msra.mxu0 %v418_v50  ;;  %960 = vmatpush1.bf16.msra.mxu1 %v418_v50  ;;  %v392_v3 = vmul.f32 %v322_v54, %v273_v55  ;;  %v296_v48 = vunpack.c.h.bf16 %v246_v39  ;;  %v294_v52 = vunpack.c.h.bf16 %v245_v40  ;;  %v295_v54 = vunpack.c.l.bf16 %v246_v39  ;;  %v1014_v25 = vld [vmem:[%s1227_s2 + $0x20] ss:$8 sps:$4 sm:$0xff]  }
  0x9d   : > { %561 = vmatprep.subr.bf16.mxu0 %v421_v57  ;;  %952 = vmatprep.subr.bf16.mxu1 %v421_v57  ;;  %v423_v7 = vpack.c.bf16 %v395_v58, %v393_v59  ;;  %v293_v55 = vunpack.c.l.bf16 %v245_v40  ;;  %v297_v61 = vunpack.c.l.bf16 %v247_v53 }
  0x9e   : > { %v337_v4 = vpop.permute.xlu1 %336  ;;  %v332_v5 = vpop.permute.xlu0 %331  ;;  %v422_v15 = vpack.c.bf16 %v394_v2, %v392_v3  ;;  %v1047_v2 = vmov 65535  }
  0x9f   : > { %v399_v8 = vmul.f32 %v337_v4, %v280_v56  ;;  %v397_v9 = vmul.f32 %v332_v5, %v278_v60  ;;  %v398_v16 = vmul.f32 %v337_v4, %v279_v63  ;;  %v396_v17 = vmul.f32 %v332_v5, %v277_v0 }
  0xa0   : > { %562 = vmatpush1.bf16.msra.mxu0 %v420_v1  ;;  %961 = vmatpush1.bf16.msra.mxu1 %v420_v1  ;;  %v298_v1 = vunpack.c.h.bf16 %v247_v53  ;;  %v551_v3 = vsel %vm549_vm1, 4294967295, %v1047_v2 }
  0xa1   : > { %563 = vmatprep.subr.bf16.mxu0 %v423_v7  ;;  %953 = vmatprep.subr.bf16.mxu1 %v423_v7  ;;  %v425_v21 = vpack.c.bf16 %v399_v8, %v397_v9  ;;  %v424_v29 = vpack.c.bf16 %v398_v16, %v396_v17  ;;  %v552_v11 = vsel %vm550_vm2, %v551_v3, 0  ;;  %v998_v17 = vld [vmem:[%s1227_s2] ss:$8 sps:$4 sm:$0xff]  }
  0xa2   : > { %v347_v18 = vpop.permute.xlu1 %346  ;;  %v342_v19 = vpop.permute.xlu0 %341 }
  0xa3   : > { %v403_v22 = vmul.f32 %v347_v18, %v284_v6  ;;  %v401_v23 = vmul.f32 %v342_v19, %v282_v10  ;;  %v402_v30 = vmul.f32 %v347_v18, %v283_v13  ;;  %v400_v31 = vmul.f32 %v342_v19, %v281_v14  ;;  %v1001_v18 = vld [vmem:[%s1227_s2 + $0x40] ss:$8 sps:$4 sm:$0xff]   ;;  %v1004_v19 = vld [vmem:[%s1227_s2 + $0x14] ss:$8 sps:$4 sm:$0xff]  }
  0xa4   : > { %564 = vmatpush1.bf16.msra.mxu0 %v422_v15  ;;  %962 = vmatpush1.bf16.msra.mxu1 %v422_v15 }
  0xa5   : > { %565 = vmatprep.subr.bf16.mxu0 %v425_v21  ;;  %954 = vmatprep.subr.bf16.mxu1 %v425_v21  ;;  %v427_v35 = vpack.c.bf16 %v403_v22, %v401_v23  ;;  %v426_v43 = vpack.c.bf16 %v402_v30, %v400_v31  ;;  %v1008_v21 = vld [vmem:[%s1227_s2 + $0x10] ss:$8 sps:$4 sm:$0xff]   ;;  %v1010_v23 = vld [vmem:[%s1227_s2 + $0x24] ss:$8 sps:$4 sm:$0xff]  }
  0xa6   : > { %v357_v32 = vpop.permute.xlu1 %356  ;;  %v352_v33 = vpop.permute.xlu0 %351  ;;  %v1009_v22 = vld [vmem:[%s1227_s2 + $0x50] ss:$8 sps:$4 sm:$0xff]  }
  0xa7   : > { %v407_v36 = vmul.f32 %v357_v32, %v288_v20  ;;  %v405_v37 = vmul.f32 %v352_v33, %v286_v24  ;;  %v406_v44 = vmul.f32 %v357_v32, %v287_v27  ;;  %v404_v45 = vmul.f32 %v352_v33, %v285_v28  ;;  %v1006_v20 = vld [vmem:[%s1227_s2 + $0x54] ss:$8 sps:$4 sm:$0xff]   ;;  %v1012_v24 = vld [vmem:[%s1227_s2 + $0x64] ss:$8 sps:$4 sm:$0xff]   ;;  %v1021_v30 = vld [vmem:[%s1227_s2 + $0x70] ss:$8 sps:$4 sm:$0xff]  }
  0xa8   : > { %566 = vmatpush1.bf16.msra.mxu0 %v424_v29  ;;  %963 = vmatpush1.bf16.msra.mxu1 %v424_v29  ;;  %v1016_v27 = vld [vmem:[%s1227_s2 + $0x34] ss:$8 sps:$4 sm:$0xff]   ;;  %v1020_v29 = vld [vmem:[%s1227_s2 + $0x30] ss:$8 sps:$4 sm:$0xff]  }
  0xa9   : > { %567 = vmatprep.subr.bf16.mxu0 %v427_v35  ;;  %955 = vmatprep.subr.bf16.mxu1 %v427_v35  ;;  %v429_v49 = vpack.c.bf16 %v407_v36, %v405_v37  ;;  %v428_v56 = vpack.c.bf16 %v406_v44, %v404_v45  ;;  %v1018_v28 = vld [vmem:[%s1227_s2 + $0x74] ss:$8 sps:$4 sm:$0xff]  }
  0xaa   : > { %v367_v46 = vpop.permute.xlu1 %366  ;;  %v362_v47 = vpop.permute.xlu0 %361 }
  0xab   : > { %v411_v50 = vmul.f32 %v367_v46, %v292_v34  ;;  %v409_v51 = vmul.f32 %v362_v47, %v290_v38  ;;  %v410_v57 = vmul.f32 %v367_v46, %v291_v41  ;;  %v408_v58 = vmul.f32 %v362_v47, %v289_v42 }
  0xac   : > { %568 = vmatpush1.bf16.msra.mxu0 %v426_v43  ;;  %964 = vmatpush1.bf16.msra.mxu1 %v426_v43 }
  0xad   : > { %569 = vmatprep.subr.bf16.mxu0 %v429_v49  ;;  %956 = vmatprep.subr.bf16.mxu1 %v429_v49  ;;  %v431_v62 = vpack.c.bf16 %v411_v50, %v409_v51  ;;  %v430_v4 = vpack.c.bf16 %v410_v57, %v408_v58 }
  0xae   : > { %v377_v59 = vpop.permute.xlu1 %376  ;;  %v372_v60 = vpop.permute.xlu0 %371 }
  0xaf   : > { %v415_v63 = vmul.f32 %v377_v59, %v296_v48  ;;  %v413_v0 = vmul.f32 %v372_v60, %v294_v52  ;;  %v414_v5 = vmul.f32 %v377_v59, %v295_v54  ;;  %v412_v6 = vmul.f32 %v372_v60, %v293_v55 }
  0xb0   : > { %570 = vmatpush1.bf16.msra.mxu0 %v428_v56  ;;  %965 = vmatpush1.bf16.msra.mxu1 %v428_v56 }
  0xb1   : > { %571 = vmatprep.subr.bf16.mxu0 %v431_v62  ;;  %957 = vmatprep.subr.bf16.mxu1 %v431_v62  ;;  %v433_v8 = vpack.c.bf16 %v415_v63, %v413_v0  ;;  %v432_v13 = vpack.c.bf16 %v414_v5, %v412_v6 }
  0xb2   : > { %v382_v7 = vpop.permute.xlu0 %381 }
  0xb3   : > { %v416_v9 = vmul.f32 %v382_v7, %v297_v61  ;;  %v417_v10 = vmul.f32 %v382_v7, %v298_v1 }
  0xb4   : > { %572 = vmatpush1.bf16.msra.mxu0 %v430_v4  ;;  %966 = vmatpush1.bf16.msra.mxu1 %v430_v4 }
  0xb5   : > { %v435_v12 = vpack.c.bf16 %v417_v10, %v417_v10  ;;  %573 = vmatprep.subr.bf16.mxu0 %v433_v8  ;;  %v434_v14 = vpack.c.bf16 %v416_v9, %v416_v9  ;;  %958 = vmatprep.subr.bf16.mxu1 %v433_v8 }
  0xb7   : > { %v557_v15 = vand.u32 %v552_v11, %v435_v12  ;;  %v554_v16 = vand.u32 %v552_v11, %v434_v14 }
  0xb8   : > { %574 = vmatpush1.bf16.msra.mxu0 %v432_v13  ;;  %967 = vmatpush1.bf16.msra.mxu1 %v432_v13 }
  0xb9   : > { %575 = vmatprep.subr.bf16.mxu0 %v557_v15  ;;  %959 = vmatprep.subr.bf16.mxu1 %v557_v15 }
  0xbc   : > { %576 = vmatpush1.bf16.msra.mxu0 %v554_v16  ;;  %968 = vmatpush1.bf16.msra.mxu1 %v554_v16 }
  0xbf   : > { %592 = vmatmul.mubr.bf16.vlgmr.msra.gmra.mrb[0].mxu0 %v998_v17  ;;  %632 = vmatmul.mubr.bf16.vlgmr.msra.gmra.mrb[0].mxu1 %v1001_v18 }
  0xc0   : > { %909 = vmatprep.mubr.msk.bf16.mxu0 %vm524_vm0, %v1004_v19  ;;  %913 = vmatprep.mubr.msk.bf16.mxu1 %vm524_vm0, %v1006_v20 }
  0xc7   : > { %602 = vmatmul.mubr.bf16.gmra.mrb[4].mxu0 %v1008_v21  ;;  %642 = vmatmul.mubr.bf16.gmra.mrb[4].mxu1 %v1009_v22 }
  0xc8   : > { %910 = vmatprep.mubr.msk.bf16.mxu0 %vm524_vm0, %v1010_v23  ;;  %914 = vmatprep.mubr.msk.bf16.mxu1 %vm524_vm0, %v1012_v24 }
  0xcf   : > { %612 = vmatmul.mubr.bf16.gmra.mrb[8].mxu0 %v1014_v25  ;;  %652 = vmatmul.mubr.bf16.gmra.mrb[8].mxu1 %v1015_v26 }
  0xd0   : > { %911 = vmatprep.mubr.msk.bf16.mxu0 %vm524_vm0, %v1016_v27  ;;  %915 = vmatprep.mubr.msk.bf16.mxu1 %vm524_vm0, %v1018_v28 }
  0xd7   : > { %622 = vmatmul.mubr.bf16.gmra.mrb[12].mxu0 %v1020_v29  ;;  %662 = vmatmul.mubr.bf16.gmra.mrb[12].mxu1 %v1021_v30 }
 0x192   : > { %v593_v31 = vpop.f32.mrb[0].mxu0  ;;  %v633_v32 = vpop.f32.mrb[0].mxu1 }
 0x193   : > { %v595_v33 = vpop.f32.mrb[1].mxu0  ;;  %v635_v35 = vpop.f32.mrb[1].mxu1 }
 0x194   : > { %v935_v34 = vpack.c.bf16 %v595_v33, %v593_v31  ;;  %v597_v36 = vpop.f32.mrb[2].mxu0  ;;  %v943_v37 = vpack.c.bf16 %v635_v35, %v633_v32  ;;  %v637_v38 = vpop.f32.mrb[2].mxu1 }
 0x195   : > { %v599_v39 = vpop.f32.mrb[3].mxu0  ;;  %v639_v41 = vpop.f32.mrb[3].mxu1 }
 0x196   : > { %768 = vst [vmem:[%s1198_s8] sm:$0xff] %v935_v34  ;;  %v936_v40 = vpack.c.bf16 %v599_v39, %v597_v36  ;;  %776 = vst [vmem:[%s1198_s8 + $0x40] sm:$0xff] %v943_v37  ;;  %v944_v42 = vpack.c.bf16 %v639_v41, %v637_v38 }
 0x198   : > { %769 = vst [vmem:[%s1198_s8 + $0x8] sm:$0xff] %v936_v40  ;;  %777 = vst [vmem:[%s1198_s8 + $0x48] sm:$0xff] %v944_v42 }
 0x19a   : > { %v603_v43 = vpop.f32.mrb[4].mxu0  ;;  %v643_v44 = vpop.f32.mrb[4].mxu1 }
 0x19b   : > { %v605_v45 = vpop.f32.mrb[5].mxu0  ;;  %v645_v47 = vpop.f32.mrb[5].mxu1 }
 0x19c   : > { %v937_v46 = vpack.c.bf16 %v605_v45, %v603_v43  ;;  %v607_v48 = vpop.f32.mrb[6].mxu0  ;;  %v945_v49 = vpack.c.bf16 %v645_v47, %v643_v44  ;;  %v647_v50 = vpop.f32.mrb[6].mxu1 }
 0x19d   : > { %v609_v51 = vpop.f32.mrb[7].mxu0  ;;  %v649_v53 = vpop.f32.mrb[7].mxu1 }
 0x19e   : > { %770 = vst [vmem:[%s1198_s8 + $0x10] sm:$0xff] %v937_v46  ;;  %v938_v52 = vpack.c.bf16 %v609_v51, %v607_v48  ;;  %778 = vst [vmem:[%s1198_s8 + $0x50] sm:$0xff] %v945_v49  ;;  %v946_v54 = vpack.c.bf16 %v649_v53, %v647_v50 }
 0x1a0   : > { %771 = vst [vmem:[%s1198_s8 + $0x18] sm:$0xff] %v938_v52  ;;  %779 = vst [vmem:[%s1198_s8 + $0x58] sm:$0xff] %v946_v54 }
 0x1a2   : > { %v613_v55 = vpop.f32.mrb[8].mxu0  ;;  %v653_v56 = vpop.f32.mrb[8].mxu1 }
 0x1a3   : > { %v615_v57 = vpop.f32.mrb[9].mxu0  ;;  %v655_v59 = vpop.f32.mrb[9].mxu1 }
 0x1a4   : > { %v939_v58 = vpack.c.bf16 %v615_v57, %v613_v55  ;;  %v617_v60 = vpop.f32.mrb[10].mxu0  ;;  %v947_v61 = vpack.c.bf16 %v655_v59, %v653_v56  ;;  %v657_v62 = vpop.f32.mrb[10].mxu1 }
 0x1a5   : > { %v619_v63 = vpop.f32.mrb[11].mxu0  ;;  %v659_v1 = vpop.f32.mrb[11].mxu1 }
 0x1a6   : > { %772 = vst [vmem:[%s1198_s8 + $0x20] sm:$0xff] %v939_v58  ;;  %v940_v0 = vpack.c.bf16 %v619_v63, %v617_v60  ;;  %780 = vst [vmem:[%s1198_s8 + $0x60] sm:$0xff] %v947_v61  ;;  %v948_v2 = vpack.c.bf16 %v659_v1, %v657_v62 }
 0x1a8   : > { %773 = vst [vmem:[%s1198_s8 + $0x28] sm:$0xff] %v940_v0  ;;  %781 = vst [vmem:[%s1198_s8 + $0x68] sm:$0xff] %v948_v2 }
 0x1aa   : > { %v623_v3 = vpop.f32.mrb[12].mxu0  ;;  %v663_v4 = vpop.f32.mrb[12].mxu1 }
 0x1ab   : > { %v625_v5 = vpop.f32.mrb[13].mxu0  ;;  %v665_v7 = vpop.f32.mrb[13].mxu1 }
 0x1ac   : > { %v941_v6 = vpack.c.bf16 %v625_v5, %v623_v3  ;;  %v627_v8 = vpop.f32.mrb[14].mxu0  ;;  %v949_v9 = vpack.c.bf16 %v665_v7, %v663_v4  ;;  %v667_v10 = vpop.f32.mrb[14].mxu1 }
 0x1ad   : > { %v629_v11 = vpop.f32.mrb[15].mxu0  ;;  %v669_v13 = vpop.f32.mrb[15].mxu1 }
 0x1ae   : > { %774 = vst [vmem:[%s1198_s8 + $0x30] sm:$0xff] %v941_v6  ;;  %v942_v12 = vpack.c.bf16 %v629_v11, %v627_v8  ;;  %782 = vst [vmem:[%s1198_s8 + $0x70] sm:$0xff] %v949_v9  ;;  %v950_v14 = vpack.c.bf16 %v669_v13, %v667_v10 }
 0x1b0   : > { %775 = vst [vmem:[%s1198_s8 + $0x38] sm:$0xff] %v942_v12  ;;  %783 = vst [vmem:[%s1198_s8 + $0x78] sm:$0xff] %v950_v14 }
 0x1b1 PF: > { %s13_s14 = sadd.s32 1, %s1044_s14   ;;  %s1229_s12 = smov %s1040_s13 }
 0x1b2   : > { %p10_p5 = scmp.ge.s32.totalorder %s13_s14, 4   ;;  %s1230_s13 = smov %s1232_s15 }
 0x1b4   :  { %12 = sbr.rel (!%p10_p5) target bundleno = 2 (0x2), region = 65 }

</bundles_post_ra>
